<compile_context>
chip_gen: v7x
topology: tpu7x:2x2x1
jax: 0.10.0
libtpu: 0.0.40
codegen_flags: <defaults>
</compile_context>

<pallas_src>
import jax
import jax.numpy as jnp
from jax.experimental import pallas as pl
from jax.experimental.pallas import tpu as pltpu


def _fused_kernel(p_ref, o_ref):
    # p_ref is a flat f32 SMEM ref:
    #   [0:4]  x[k, i] row-major  (x[k, i] = x1[0, k, i])
    #   [4:8]  W[o, k] row-major
    #   [8:10] b
    # Everything below is scalar math on the (otherwise idle) scalar unit.
    x00 = p_ref[0]   # x[k=0, i=0]
    x01 = p_ref[1]   # x[k=0, i=1]
    x10 = p_ref[2]   # x[k=1, i=0]
    x11 = p_ref[3]   # x[k=1, i=1]

    w00 = p_ref[4]   # W[o=0, k=0]
    w01 = p_ref[5]   # W[o=0, k=1]
    w10 = p_ref[6]   # W[o=1, k=0]
    w11 = p_ref[7]   # W[o=1, k=1]

    b0 = p_ref[8]
    b1 = p_ref[9]

    # x2[i, h] = relu( x[0, i] * W[h, 0] + x[1, i] * W[h, 1] + b[h] )
    x2_00 = jnp.maximum(x00 * w00 + x10 * w01 + b0, 0.0)   # i=0, h=0
    x2_01 = jnp.maximum(x00 * w10 + x10 * w11 + b1, 0.0)   # i=0, h=1
    x2_10 = jnp.maximum(x01 * w00 + x11 * w01 + b0, 0.0)   # i=1, h=0
    x2_11 = jnp.maximum(x01 * w10 + x11 * w11 + b1, 0.0)   # i=1, h=1

    def hardtanh(v):
        return jnp.minimum(jnp.maximum(v, -1.0), 1.0)

    # out[o, h] = hardtanh( -(W[o, 0] * x2[0, h] + W[o, 1] * x2[1, h]) )
    o_ref[0] = hardtanh(-(w00 * x2_00 + w01 * x2_10))   # out[0, 0]
    o_ref[1] = hardtanh(-(w00 * x2_01 + w01 * x2_11))   # out[0, 1]
    o_ref[2] = hardtanh(-(w10 * x2_00 + w11 * x2_10))   # out[1, 0]
    o_ref[3] = hardtanh(-(w10 * x2_01 + w11 * x2_11))   # out[1, 1]


@jax.jit
def model_forward(x1, weight, bias):
    # Pack all operands into one flat f32 SMEM operand (single input DMA).
    packed = jnp.concatenate(
        [x1.reshape(4), weight.reshape(4), bias.reshape(2)]
    ).astype(jnp.float32)

    out_flat = pl.pallas_call(
        _fused_kernel,
        out_shape=jax.ShapeDtypeStruct((4,), jnp.float32),
        in_specs=[pl.BlockSpec(memory_space=pltpu.MemorySpace.SMEM)],
        out_specs=pl.BlockSpec(memory_space=pltpu.MemorySpace.SMEM),
    )(packed)

    # PyTorch unbatched conv2d output layout: (C_out=2, H_out=2, W_out=1).
    return out_flat.reshape(2, 2, 1)


def _reference(x1, weight, bias):
    # Pure-JAX reference of the same interpretation.
    v1 = jnp.transpose(x1, (0, 2, 1))
    v2 = v1 @ weight.T + bias
    x2 = jax.nn.relu(v2)
    out = -(weight @ x2[0])                 # (C_out, H)
    return jnp.clip(out, -1.0, 1.0).reshape(2, 2, 1)


if __name__ == "__main__":
    key = jax.random.PRNGKey(0)
    kx, kw, kb = jax.random.split(key, 3)

    # nn.Linear(2, 2): weight (2, 2), bias (2,), uniform(-1/sqrt(2), 1/sqrt(2)).
    # Parameters created once in f32 (no per-call casts).
    bound = 1.0 / (2.0 ** 0.5)
    weight = jax.random.uniform(kw, (2, 2), jnp.float32, -bound, bound)
    bias = jax.random.uniform(kb, (2,), jnp.float32, -bound, bound)

    x1 = jax.random.normal(kx, (1, 2, 2), jnp.float32)

    out = model_forward(x1, weight, bias)
    out = jax.block_until_ready(out)

    ref = _reference(x1, weight, bias)
    assert out.shape == (2, 2, 1)
    assert jnp.allclose(out, ref, atol=1e-5, rtol=1e-5)

    print("KERNEL_OK")
</pallas_src>

<mosaic_0001>
module attributes {stable_mosaic.version = 11 : i64} {
  func.func @_fused_kernel(%arg0: memref<10xf32, #tpu.memory_space<smem>>, %arg1: memref<4xf32, #tpu.memory_space<smem>>) attributes {dimension_semantics = [], scalar_prefetch = 0 : i64, scratch_operands = 0 : i64, tpu.core_type = #tpu.core_type<tc>} {
    %c0 = arith.constant 0 : index
    %0 = memref.load %arg0[%c0] : memref<10xf32, #tpu.memory_space<smem>>
    %c1 = arith.constant 1 : index
    %1 = memref.load %arg0[%c1] : memref<10xf32, #tpu.memory_space<smem>>
    %c2 = arith.constant 2 : index
    %2 = memref.load %arg0[%c2] : memref<10xf32, #tpu.memory_space<smem>>
    %c3 = arith.constant 3 : index
    %3 = memref.load %arg0[%c3] : memref<10xf32, #tpu.memory_space<smem>>
    %c4 = arith.constant 4 : index
    %4 = memref.load %arg0[%c4] : memref<10xf32, #tpu.memory_space<smem>>
    %c5 = arith.constant 5 : index
    %5 = memref.load %arg0[%c5] : memref<10xf32, #tpu.memory_space<smem>>
    %c6 = arith.constant 6 : index
    %6 = memref.load %arg0[%c6] : memref<10xf32, #tpu.memory_space<smem>>
    %c7 = arith.constant 7 : index
    %7 = memref.load %arg0[%c7] : memref<10xf32, #tpu.memory_space<smem>>
    %c8 = arith.constant 8 : index
    %8 = memref.load %arg0[%c8] : memref<10xf32, #tpu.memory_space<smem>>
    %c9 = arith.constant 9 : index
    %9 = memref.load %arg0[%c9] : memref<10xf32, #tpu.memory_space<smem>>
    %10 = arith.mulf %0, %4 : f32
    %11 = arith.mulf %2, %5 : f32
    %12 = arith.addf %10, %11 : f32
    %13 = arith.addf %12, %8 : f32
    %cst = arith.constant 0.000000e+00 : f32
    %14 = arith.maximumf %13, %cst : f32
    %15 = arith.mulf %0, %6 : f32
    %16 = arith.mulf %2, %7 : f32
    %17 = arith.addf %15, %16 : f32
    %18 = arith.addf %17, %9 : f32
    %cst_0 = arith.constant 0.000000e+00 : f32
    %19 = arith.maximumf %18, %cst_0 : f32
    %20 = arith.mulf %1, %4 : f32
    %21 = arith.mulf %3, %5 : f32
    %22 = arith.addf %20, %21 : f32
    %23 = arith.addf %22, %8 : f32
    %cst_1 = arith.constant 0.000000e+00 : f32
    %24 = arith.maximumf %23, %cst_1 : f32
    %25 = arith.mulf %1, %6 : f32
    %26 = arith.mulf %3, %7 : f32
    %27 = arith.addf %25, %26 : f32
    %28 = arith.addf %27, %9 : f32
    %cst_2 = arith.constant 0.000000e+00 : f32
    %29 = arith.maximumf %28, %cst_2 : f32
    %30 = arith.mulf %4, %14 : f32
    %31 = arith.mulf %5, %24 : f32
    %32 = arith.addf %30, %31 : f32
    %cst_3 = arith.constant 0.000000e+00 : f32
    %33 = arith.subf %cst_3, %32 : f32
    %cst_4 = arith.constant -1.000000e+00 : f32
    %34 = arith.maximumf %33, %cst_4 : f32
    %cst_5 = arith.constant 1.000000e+00 : f32
    %35 = arith.minimumf %34, %cst_5 : f32
    %c0_6 = arith.constant 0 : index
    %36 = memref.load %arg1[%c0_6] : memref<4xf32, #tpu.memory_space<smem>>
    memref.store %35, %arg1[%c0_6] : memref<4xf32, #tpu.memory_space<smem>>
    %37 = arith.mulf %4, %19 : f32
    %38 = arith.mulf %5, %29 : f32
    %39 = arith.addf %37, %38 : f32
    %cst_7 = arith.constant 0.000000e+00 : f32
    %40 = arith.subf %cst_7, %39 : f32
    %cst_8 = arith.constant -1.000000e+00 : f32
    %41 = arith.maximumf %40, %cst_8 : f32
    %cst_9 = arith.constant 1.000000e+00 : f32
    %42 = arith.minimumf %41, %cst_9 : f32
    %c1_10 = arith.constant 1 : index
    %43 = memref.load %arg1[%c1_10] : memref<4xf32, #tpu.memory_space<smem>>
    memref.store %42, %arg1[%c1_10] : memref<4xf32, #tpu.memory_space<smem>>
    %44 = arith.mulf %6, %14 : f32
    %45 = arith.mulf %7, %24 : f32
    %46 = arith.addf %44, %45 : f32
    %cst_11 = arith.constant 0.000000e+00 : f32
    %47 = arith.subf %cst_11, %46 : f32
    %cst_12 = arith.constant -1.000000e+00 : f32
    %48 = arith.maximumf %47, %cst_12 : f32
    %cst_13 = arith.constant 1.000000e+00 : f32
    %49 = arith.minimumf %48, %cst_13 : f32
    %c2_14 = arith.constant 2 : index
    %50 = memref.load %arg1[%c2_14] : memref<4xf32, #tpu.memory_space<smem>>
    memref.store %49, %arg1[%c2_14] : memref<4xf32, #tpu.memory_space<smem>>
    %51 = arith.mulf %6, %19 : f32
    %52 = arith.mulf %7, %29 : f32
    %53 = arith.addf %51, %52 : f32
    %cst_15 = arith.constant 0.000000e+00 : f32
    %54 = arith.subf %cst_15, %53 : f32
    %cst_16 = arith.constant -1.000000e+00 : f32
    %55 = arith.maximumf %54, %cst_16 : f32
    %cst_17 = arith.constant 1.000000e+00 : f32
    %56 = arith.minimumf %55, %cst_17 : f32
    %c3_18 = arith.constant 3 : index
    %57 = memref.load %arg1[%c3_18] : memref<4xf32, #tpu.memory_space<smem>>
    memref.store %56, %arg1[%c3_18] : memref<4xf32, #tpu.memory_space<smem>>
    return
  }
}

</mosaic_0001>

<bundles_post_ra>
// kernel: model_forward.1
= control target key start
LH: loop header
LB: loop body
LE: loop exit
PB: predicated region body
PF: predicated region fallthrough
CT: control target
= control target key end

     0   :  { %6 = vsyncpa [#allocation3], 0  ;;  %s187_s0 = inlined_call_operand.vmem [shape: f32[10], index: 0, kind: input, shape index: {}]   ;;  %s188_s1 = inlined_call_operand.vmem [shape: f32[4], index: 1, kind: output, shape index: {}]  }
   0x1   :  { %7 = vsyncpa [#allocation4], 0  ;;  %s14_s8 = sshll.u32 %s187_s0, 4  ;;  %s15_s8 = int_to_ptr.vmem [resolvable:$true] %s14_s8 }
   0x2   :  { %s114_s9 = scalar_lea.vmem %s15_s8, 16  ;;  %p119_p1 = scmp.lt.s32.totalorder %s15_s8, %s15_s8 }
   0x3   :  { %p115_p0 = scmp.ne.s32.totalorder %s15_s8, %s114_s9  ;;  %p120_p2 = scmp.lt.s32.totalorder %s114_s9, %s114_s9 }
   0x5   :  { %p121_p3 = por %p120_p2, %p119_p1 }
   0x7   :  { %p122_p4 = pnand %p121_p3, %p115_p0 }
   0x9   :  { %125 = shalt.err (!%p122_p4)
}
   0xa   :  { %s142_s10 = smov [#allocation2]  }
   0xb   :  { %17 = dma.vmem_to_smem %s15_s8, 16, %s142_s10, [#allocation3]  }
   0xc   :  { %138 = dma.done.wait [#allocation3], 16  }
   0xd   :  { %139 = vsyncadd [#allocation3], 4294967280 }
   0xe   :  { %21 = sfence }
   0xf   :  { %s22_s11 = sld [smem:[#allocation2]]  ;;  %s101_s12 = sld [smem:[#allocation2 + $0x2]] }
  0x10   :  { %s160_s13 = sld [smem:[#allocation2 + $0x4]]  ;;  %s162_s0 = sld [smem:[#allocation2 + $0x5]] }
  0x11   :  { %s164_s14 = sld [smem:[#allocation2 + $0x6]]  ;;  %s166_s15 = sld [smem:[#allocation2 + $0x7]] }
  0x12   :  { %s100_s16 = sld [smem:[#allocation2 + $0x1]]  ;;  %s102_s17 = sld [smem:[#allocation2 + $0x3]] }
  0x13   :  { %s107_s18 = sld [smem:[#allocation2 + $0x8]]  ;;  %s108_s19 = sld [smem:[#allocation2 + $0x9]] }
  0x14   :  { %s143_s30 = smov 0.0  }
  0x16   :  { %s32_s20 = smul.f32 %s160_s13, %s22_s11 }
  0x17   :  { %s33_s21 = smul.f32 %s162_s0, %s101_s12 }
  0x18   :  { %s37_s22 = smul.f32 %s164_s14, %s22_s11 }
  0x19   :  { %s34_s23 = sadd.f32 %s33_s21, %s32_s20  ;;  %s38_s24 = smul.f32 %s166_s15, %s101_s12 }
  0x1a   :  { %s42_s25 = smul.f32 %s160_s13, %s100_s16 }
  0x1b   :  { %s35_s26 = sadd.f32 %s107_s18, %s34_s23  ;;  %s43_s27 = smul.f32 %s162_s0, %s102_s17 }
  0x1c   :  { %s39_s28 = sadd.f32 %s38_s24, %s37_s22  ;;  %s47_s29 = smul.f32 %s164_s14, %s100_s16 }
  0x1d   :  { %s36_s2 = smax.f32 %s143_s30, %s35_s26  ;;  %s44_s3 = sadd.f32 %s43_s27, %s42_s25 }
  0x1e   :  { %s40_s4 = sadd.f32 %s108_s19, %s39_s28  ;;  %s48_s5 = smul.f32 %s166_s15, %s102_s17 }
  0x1f   :  { %s45_s6 = sadd.f32 %s107_s18, %s44_s3  ;;  %s52_s7 = smul.f32 %s160_s13, %s36_s2 }
  0x20   :  { %s41_s8 = smax.f32 %s143_s30, %s40_s4  ;;  %s49_s9 = sadd.f32 %s48_s5, %s47_s29 }
  0x21   :  { %s46_s10 = smax.f32 %s143_s30, %s45_s6  ;;  %s60_s11 = smul.f32 %s160_s13, %s41_s8 }
  0x22   :  { %s50_s12 = sadd.f32 %s108_s19, %s49_s9  ;;  %s53_s20 = smul.f32 %s162_s0, %s46_s10 }
  0x23   :  { %s68_s21 = smul.f32 %s164_s14, %s36_s2  ;;  %s90_s25 = sshll.u32 %s188_s1, 4  ;;  %s91_s25 = int_to_ptr.vmem [resolvable:$true] %s90_s25 }
  0x24   :  { %s51_s22 = smax.f32 %s143_s30, %s50_s12  ;;  %s54_s16 = sadd.f32 %s53_s20, %s52_s7 }
  0x25   :  { %s61_s23 = smul.f32 %s162_s0, %s51_s22  ;;  %s144_s3 = smov -1.0  }
  0x26   :  { %s55_s27 = ssub.f32 0.0, %s54_s16  ;;  %s69_s17 = smul.f32 %s166_s15, %s46_s10 }
  0x27   :  { %s62_s18 = sadd.f32 %s61_s23, %s60_s11  ;;  %s76_s28 = smul.f32 %s164_s14, %s41_s8 }
  0x28   :  { %s56_s4 = smax.f32 %s144_s3, %s55_s27  ;;  %s70_s29 = sadd.f32 %s69_s17, %s68_s21 }
  0x29   :  { %s145_s5 = smov 1.0   ;;  %s63_s19 = ssub.f32 0.0, %s62_s18 }
  0x2a   :  { %s57_s13 = smin.f32 %s145_s5, %s56_s4  ;;  %s77_s2 = smul.f32 %s166_s15, %s51_s22 }
  0x2b   :  { %59 = sst [smem:[#allocation5]] %s57_s13  ;;  %s64_s6 = smax.f32 %s144_s3, %s63_s19 }
  0x2c   :  { %s71_s30 = ssub.f32 0.0, %s70_s29  ;;  %s65_s7 = smin.f32 %s145_s5, %s64_s6 }
  0x2d   :  { %s78_s0 = sadd.f32 %s77_s2, %s76_s28  ;;  %s126_s8 = scalar_lea.vmem %s91_s25, 16 }
  0x2e   :  { %67 = sst [smem:[#allocation5 + $0x1]] %s65_s7  ;;  %s72_s9 = smax.f32 %s144_s3, %s71_s30 }
  0x2f   :  { %s73_s12 = smin.f32 %s145_s5, %s72_s9  ;;  %s79_s1 = ssub.f32 0.0, %s78_s0 }
  0x30   :  { %75 = sst [smem:[#allocation5 + $0x2]] %s73_s12  ;;  %p127_p5 = scmp.ne.s32.totalorder %s91_s25, %s126_s8 }
  0x31   :  { %s80_s10 = smax.f32 %s144_s3, %s79_s1  ;;  %p131_p6 = scmp.lt.s32.totalorder %s91_s25, %s91_s25 }
  0x32   :  { %s81_s14 = smin.f32 %s145_s5, %s80_s10  ;;  %p132_p7 = scmp.lt.s32.totalorder %s126_s8, %s126_s8 }
  0x33   :  { %83 = sst [smem:[#allocation5 + $0x3]] %s81_s14 }
  0x34   :  { %p133_p8 = por %p132_p7, %p131_p6 }
  0x36   :  { %p134_p9 = pnand %p133_p8, %p127_p5 }
  0x38   :  { %137 = shalt.err (!%p134_p9)
}
  0x39   :  { %s146_s15 = smov [#allocation5]  }
  0x3a   :  { %93 = dma.smem_to_vmem %s146_s15, 16, %s91_s25, [#allocation4]  }
  0x3b   :  { %140 = dma.done.wait [#allocation4], 16  }
  0x3c   :  { %141 = vsyncadd [#allocation4], 4294967280 }
  0x3d   :  { %97 = sfence }
  0x3e   :  { %98 = vsyncpa [#allocation3], 1 }
  0x3f   :  { %99 = vsyncpa [#allocation4], 1 }

</bundles_post_ra>
